<compile_context>
chip_gen: v7x
topology: tpu7x:2x2x1
jax: 0.10.0
libtpu: 0.0.40
codegen_flags: <defaults>
</compile_context>

<pallas_src>
import functools

import numpy as np
import jax
import jax.numpy as jnp
from jax.experimental import pallas as pl
from jax.experimental.pallas import tpu as pltpu


def int2list(val):
    return list(val) if isinstance(val, (list, tuple)) else [val]


def compute_idx_from_channel_split(channel_split):
    """Start index of each channel group in the max (full-width) layout."""
    starts, acc = [], 0
    for c in channel_split:
        starts.append(acc)
        acc += c
    return starts


def _split_channel_idx(max_channel_split, active_channel_split):
    assert len(active_channel_split) == len(max_channel_split)
    starts = compute_idx_from_channel_split(max_channel_split)
    idx = []
    for i in range(len(starts)):
        idx.extend(range(starts[i], starts[i] + active_channel_split[i]))
    return idx


def _cls_head_kernel(x_ref, w_ref, b_ref, o_ref):
    """One (batch-tile, out-tile) block: y = x @ w + b (BN already folded into w/b).

    x_ref: (TM, Kp)  activation tile (Kp = K padded to a multiple of 128)
    w_ref: (Kp, TN)  BN-folded, pre-transposed weight tile (lane-dense in TN)
    b_ref: (1, TN)   BN-folded bias slice (f32)
    o_ref: (TM, TN)
    """
    y = jax.lax.dot_general(
        x_ref[...], w_ref[...],
        dimension_numbers=(((1,), (0,)), ((), ())),
        preferred_element_type=jnp.float32)          # MXU, f32 accumulate
    o_ref[...] = (y + b_ref[...]).astype(o_ref.dtype)


def dynamic_cls_head_forward(x, bn_weight, bn_bias, bn_running_mean, bn_running_var,
                             linear_weight, linear_bias,
                             max_channel_split, active_channel_split,
                             out_features=None, eps=1e-5, tm=None, tn=None):
    """Pallas implementation of DynamicClsHead.forward (eval mode).

    x:               (N, in_features)  with in_features == sum(active_channel_split)
    bn_*:            (max_in,)         DynamicBatchNorm1dWithIdx parameters
    linear_weight:   (out_features, max_in)
    linear_bias:     (out_features,) or None
    """
    idx_list = _split_channel_idx(max_channel_split, active_channel_split)
    idx = np.asarray(idx_list, dtype=np.int32)

    N, K = x.shape
    assert K == idx.shape[0], (K, idx.shape)
    if out_features is None:
        out_features = linear_weight.shape[0]

    # ---- Trace-time parameter prep: gather at split_channel_idx, fold BN into
    # ---- W/b (in f32), transpose once to (K, out), zero-pad K to a lane multiple.
    gamma = bn_weight[idx].astype(jnp.float32)
    beta = bn_bias[idx].astype(jnp.float32)
    mean = bn_running_mean[idx].astype(jnp.float32)
    var = bn_running_var[idx].astype(jnp.float32)

    scale = gamma * jax.lax.rsqrt(var + jnp.float32(eps))          # (K,)
    shift = beta - mean * scale                                    # (K,)

    w_act = linear_weight[:out_features][:, idx].astype(jnp.float32)   # (O, K)
    w_folded = w_act * scale[None, :]                                   # (O, K)
    if linear_bias is None:
        b_folded = w_act @ shift                                        # (O,)
    else:
        b_folded = linear_bias[:out_features].astype(jnp.float32) + w_act @ shift

    Kp = ((K + 127) // 128) * 128
    w_kt = w_folded.T.astype(x.dtype)                                   # (K, O)
    if Kp != K:
        w_kt = jnp.pad(w_kt, ((0, Kp - K), (0, 0)))
        x_in = jnp.pad(x, ((0, 0), (0, Kp - K)))
    else:
        x_in = x
    b2 = b_folded.reshape(1, out_features)                              # f32

    # ---- Tile selection.
    itemsize = jnp.dtype(x.dtype).itemsize
    if tm is None:
        tm = N if N <= 256 else 256
    if tn is None:
        if out_features <= 128:
            tn = out_features
        else:
            tn = min(512, out_features)
            # Ensure >=2 out-feature tiles so both v7x TensorCores get work
            # (parallel axes are sharded across cores).
            if pl.cdiv(out_features, tn) < 2:
                tn = max(128, (((out_features + 1) // 2) + 127) // 128 * 128)

    # Keep the double-buffered working set under a conservative budget so the
    # kernel fits v5e's 16 MiB scoped-VMEM default (and trivially v6e/v7x).
    def _vmem_bytes(tm_, tn_):
        return 2 * ((tm_ * Kp + Kp * tn_ + tm_ * tn_) * itemsize + tn_ * 4)

    budget = 12 * 1024 * 1024
    while _vmem_bytes(tm, tn) > budget:
        if tn > 128:
            tn = max(128, ((tn // 2) + 127) // 128 * 128)
        elif tm >= 256 and tm % 128 == 0:
            tm = tm // 2
        else:
            break

    n_batch_tiles = pl.cdiv(N, tm)
    n_out_tiles = pl.cdiv(out_features, tn)

    # ---- Grid ordering: put the tile axis of the LARGER streamed tensor on the
    # ---- outer grid dimension so its blocks are read from HBM exactly once
    # ---- (Pallas skips the DMA when the block index is unchanged).
    out_major = out_features >= N
    if out_major:
        grid = (n_out_tiles, n_batch_tiles)          # j outer, i inner
        x_map = lambda j, i: (i, 0)
        w_map = lambda j, i: (0, j)
        b_map = lambda j, i: (0, j)
        o_map = lambda j, i: (i, j)
        x_reads, w_reads = n_out_tiles, 1
    else:
        grid = (n_batch_tiles, n_out_tiles)          # i outer, j inner
        x_map = lambda i, j: (i, 0)
        w_map = lambda i, j: (0, j)
        b_map = lambda i, j: (0, j)
        o_map = lambda i, j: (i, j)
        x_reads, w_reads = 1, n_batch_tiles

    cost = pl.CostEstimate(
        flops=int(2 * N * out_features * Kp),
        transcendentals=0,
        bytes_accessed=int(itemsize * (x_reads * N * Kp + w_reads * Kp * out_features
                                       + N * out_features)
                           + 4 * out_features),
    )

    out = pl.pallas_call(
        _cls_head_kernel,
        out_shape=jax.ShapeDtypeStruct((N, out_features), x.dtype),
        grid=grid,
        in_specs=[
            pl.BlockSpec((tm, Kp), x_map),    # activation tile
            pl.BlockSpec((Kp, tn), w_map),    # folded weight tile (lane-dense in TN)
            pl.BlockSpec((1, tn), b_map),     # folded bias slice (f32)
        ],
        out_specs=pl.BlockSpec((tm, tn), o_map),
        compiler_params=pltpu.CompilerParams(
            dimension_semantics=("parallel", "parallel"),
            vmem_limit_bytes=32 * 1024 * 1024),
        cost_estimate=cost,
    )(x_in, w_kt, b2)
    return out


def _reference_forward(x, bn_weight, bn_bias, bn_running_mean, bn_running_var,
                       linear_weight, linear_bias,
                       max_channel_split, active_channel_split,
                       out_features, eps=1e-5):
    """Pure-JAX reference mirroring the PyTorch forward (eval mode)."""
    idx = np.asarray(_split_channel_idx(max_channel_split, active_channel_split))
    scale = bn_weight[idx] * jax.lax.rsqrt(bn_running_var[idx] + eps)
    xh = (x - bn_running_mean[idx]) * scale + bn_bias[idx]
    y = xh @ linear_weight[:out_features][:, idx].T
    if linear_bias is not None:
        y = y + linear_bias[:out_features]
    return y


if __name__ == "__main__":
    key = jax.random.PRNGKey(0)
    k = jax.random.split(key, 7)

    # Module config (synthetic, deterministic init, SMALL shapes).
    max_channel_split = [8, 8, 16]        # max feature dim = 32
    active_channel_split = [4, 8, 8]      # active in_features = 20
    in_feature_list = int2list(sum(max_channel_split))
    out_features = 256
    N = 16

    max_in = max(in_feature_list)
    in_features = sum(active_channel_split)

    # Parameters: DynamicBatchNorm1dWithIdx + DynamicLinearWithIdx.
    bn_weight = 1.0 + 0.1 * jax.random.normal(k[0], (max_in,), dtype=jnp.float32)
    bn_bias = jax.random.normal(k[1], (max_in,), dtype=jnp.float32)
    bn_running_mean = jax.random.normal(k[2], (max_in,), dtype=jnp.float32)
    bn_running_var = jax.random.uniform(k[3], (max_in,), dtype=jnp.float32,
                                        minval=0.5, maxval=1.5)
    linear_weight = jax.random.normal(k[4], (out_features, max_in),
                                      dtype=jnp.float32) / float(np.sqrt(max_in))
    linear_bias = jax.random.normal(k[5], (out_features,), dtype=jnp.float32)

    # Input: (batch, active in_features).
    x = jax.random.normal(k[6], (N, in_features), dtype=jnp.float32)

    # Run with explicit small tiles to exercise a 2x2 grid (partial K padding path).
    out = dynamic_cls_head_forward(
        x, bn_weight, bn_bias, bn_running_mean, bn_running_var,
        linear_weight, linear_bias,
        max_channel_split, active_channel_split, out_features,
        tm=8, tn=128)
    out = jax.block_until_ready(out)

    ref = _reference_forward(
        x, bn_weight, bn_bias, bn_running_mean, bn_running_var,
        linear_weight, linear_bias,
        max_channel_split, active_channel_split, out_features)
    assert out.shape == ref.shape == (N, out_features), (out.shape, ref.shape)
    assert jnp.allclose(out, ref, atol=5e-4, rtol=5e-4), \
        float(jnp.max(jnp.abs(out - ref)))

    # Also exercise the no-bias path and the default (auto) tiling.
    out_nb = dynamic_cls_head_forward(
        x, bn_weight, bn_bias, bn_running_mean, bn_running_var,
        linear_weight, None,
        max_channel_split, active_channel_split, out_features)
    out_nb = jax.block_until_ready(out_nb)
    ref_nb = _reference_forward(
        x, bn_weight, bn_bias, bn_running_mean, bn_running_var,
        linear_weight, None,
        max_channel_split, active_channel_split, out_features)
    assert jnp.allclose(out_nb, ref_nb, atol=5e-4, rtol=5e-4), \
        float(jnp.max(jnp.abs(out_nb - ref_nb)))

    print("KERNEL_OK")
</pallas_src>

<mosaic_0001>
module attributes {stable_mosaic.version = 11 : i64} {
  func.func @_cls_head_kernel(%arg0: i32, %arg1: i32, %arg2: memref<8x128xf32, #tpu.memory_space<vmem>>, %arg3: memref<128x128xf32, #tpu.memory_space<vmem>>, %arg4: memref<1x128xf32, #tpu.memory_space<vmem>>, %arg5: memref<8x128xf32, #tpu.memory_space<vmem>>) attributes {dimension_semantics = [#tpu.dimension_semantics<parallel>, #tpu.dimension_semantics<parallel>], iteration_bounds = array<i64: 2, 2>, scalar_prefetch = 0 : i64, scratch_operands = 0 : i64, tpu.core_type = #tpu.core_type<tc>, window_params = [{transform_indices = @transform_0, window_bounds = array<i64: 8, 128>}, {transform_indices = @transform_1, window_bounds = array<i64: 128, 128>}, {transform_indices = @transform_2, window_bounds = array<i64: 1, 128>}, {transform_indices = @transform_3, window_bounds = array<i64: 8, 128>}]} {
    %c0 = arith.constant 0 : index
    %c0_0 = arith.constant 0 : index
    %0 = vector.load %arg2[%c0, %c0_0] : memref<8x128xf32, #tpu.memory_space<vmem>>, vector<8x128xf32>
    %c0_1 = arith.constant 0 : index
    %c0_2 = arith.constant 0 : index
    %1 = vector.load %arg3[%c0_1, %c0_2] : memref<128x128xf32, #tpu.memory_space<vmem>>, vector<128x128xf32>
    %cst = arith.constant dense<0.000000e+00> : vector<8x128xf32>
    %2 = tpu.matmul %0, %1, %cst {dimension_numbers = #tpu.dot_dimension_numbers<[1], [0], [0], [1], [0, 0, 1, 1], [], []>} : vector<8x128xf32>, vector<128x128xf32>, vector<8x128xf32> -> vector<8x128xf32>
    %c0_3 = arith.constant 0 : index
    %c0_4 = arith.constant 0 : index
    %3 = vector.load %arg4[%c0_3, %c0_4] : memref<1x128xf32, #tpu.memory_space<vmem>>, vector<1x128xf32>
    %4 = vector.broadcast %3 : vector<1x128xf32> to vector<8x128xf32>
    %5 = arith.addf %2, %4 : vector<8x128xf32>
    %c0_5 = arith.constant 0 : index
    %c0_6 = arith.constant 0 : index
    %6 = vector.load %arg5[%c0_5, %c0_6] : memref<8x128xf32, #tpu.memory_space<vmem>>, vector<8x128xf32>
    tpu.vector_store %arg5[%c0_5, %c0_6], %5 {strides = array<i32>} : memref<8x128xf32, #tpu.memory_space<vmem>>, vector<8x128xf32>,
    return
  }
  func.func @transform_0(%arg0: i32, %arg1: i32) -> (i32, i32) {
    %c0_i32 = arith.constant 0 : i32
    %c0_i32_0 = arith.constant 0 : i32
    return %arg1, %c0_i32 : i32, i32
  }
  func.func @transform_1(%arg0: i32, %arg1: i32) -> (i32, i32) {
    %c0_i32 = arith.constant 0 : i32
    %c0_i32_0 = arith.constant 0 : i32
    return %c0_i32, %arg0 : i32, i32
  }
  func.func @transform_2(%arg0: i32, %arg1: i32) -> (i32, i32) {
    %c0_i32 = arith.constant 0 : i32
    %c0_i32_0 = arith.constant 0 : i32
    return %c0_i32, %arg0 : i32, i32
  }
  func.func @transform_3(%arg0: i32, %arg1: i32) -> (i32, i32) {
    %c0_i32 = arith.constant 0 : i32
    return %arg1, %arg0 : i32, i32
  }
}

</mosaic_0001>

<bundles_post_ra>
// kernel: tpu_custom_call.1
= control target key start
LH: loop header
LB: loop body
LE: loop exit
PB: predicated region body
PF: predicated region fallthrough
CT: control target
= control target key end

     0   :  { %s1307_s0 = inlined_call_operand.hbm [shape: f32[16,128], index: 0, kind: input, shape index: {}]   ;;  %s1308_s1 = inlined_call_operand.hbm [shape: f32[128,256], index: 1, kind: input, shape index: {}]   ;;  %s1309_s2 = inlined_call_operand.vmem [shape: f32[1,256], index: 2, kind: input, shape index: {}]   ;;  %s1310_s3 = inlined_call_operand.hbm [shape: f32[16,256], index: 3, kind: output, shape index: {}]  }
   0x1   :  { %1318 = sst [smem:[#allocation18_spill]] %s1307_s0 }
   0x2   :  { %8 = vsyncpa [#allocation3], 0 }
   0x3   :  { %10 = vsyncpa [#allocation3 + $0x1], 0 }
   0x4   :  { %11 = vsyncpa [#allocation6], 0 }
   0x5   :  { %13 = vsyncpa [#allocation6 + $0x1], 0 }
   0x6   :  { %14 = vsyncpa [#allocation4], 0 }
   0x7   :  { %16 = vsyncpa [#allocation4 + $0x1], 0  ;;  %s951_s12 = smov 0   ;;  %s953_s13 = smov 0  }
   0x8   :  { %s955_s14 = smov 0   ;;  %s957_s15 = smov 0  }
   0x9   :  { %s959_s16 = smov 0   ;;  %s961_s17 = smov 0  }
   0xa   :  { %s963_s18 = smov 0   ;;  %s965_s19 = smov 0  }
   0xb   :  { %s967_s20 = smov 0   ;;  %s969_s21 = smov 0  }
   0xc   :  { %s971_s22 = smov 0   ;;  %s973_s23 = smov 0  }
   0xd   :  { %s975_s24 = smov 0   ;;  %s977_s25 = smov 0  }
   0xe LB: > { %1319 = sst [smem:[#allocation11_spill]] %s912_s23  ;;  %s479_s26 = sadd.s32 4294967295, %s920_s25   ;;  %s920_s25 = sphi %s977_s25, %s22_s25   ;;  %s916_s24 = sphi %s975_s24, %s1350_s24   ;;  %s912_s23 = sphi %s973_s23, %s1349_s23   ;;  %s908_s22 = sphi %s971_s22, %s1348_s22   ;;  %s904_s21 = sphi %s969_s21, %s1347_s21   ;;  %s900_s20 = sphi %s967_s20, %s1359_s20   ;;  %s896_s19 = sphi %s965_s19, %s1358_s19   ;;  %s892_s18 = sphi %s963_s18, %s1357_s18   ;;  %s888_s17 = sphi %s961_s17, %s1356_s17   ;;  %s884_s16 = sphi %s959_s16, %s1355_s16   ;;  %s880_s15 = sphi %s957_s15, %s1354_s15   ;;  %s876_s14 = sphi %s955_s14, %s1353_s14   ;;  %s872_s13 = sphi %s953_s13, %s1352_s13   ;;  %s868_s12 = sphi %s951_s12, %s1351_s12  }
   0xf   : > { %1320 = sst [smem:[#allocation12_spill]] %s916_s24  ;;  %s31_s28 = sadd.s32 1, %s912_s23 }
  0x10   : > { %s34_s29 = sadd.s32 1, %s916_s24  ;;  %p32_p0 = scmp.ge.s32.totalorder %s31_s28, 2 }
  0x11   : > { %s41_s30 = sadd.s32 1, %s900_s20  ;;  %p48_p1 = scmp.ne.s32.totalorder %s900_s20, %s896_s19 }
  0x12   : > { %p49_p2 = scmp.eq.s32.totalorder %s920_s25, 0  ;;  %s1361_s28 = smov (%p32_p0, %s31_s28), 0 }
  0x13   : > { %1321 = sst [smem:[#allocation13_spill]] %s1361_s28  ;;  %s1363_s29 = smov (!%p32_p0, %s34_s29), %s916_s24 }
  0x14   : > { %s38_s4 = ssub.s32 %s912_s23, %s1361_s28  ;;  %p1034_p3 = por %p49_p2, %p48_p1 }
  0x15   : > { %p36_p4 = scmp.ge.s32.totalorder %s1363_s29, 2  ;;  %p39_p5 = scmp.eq.s32.totalorder %s38_s4, 0 }
  0x16   : > { %p54_p6 = scmp.ne.s32.totalorder %s896_s19, %s892_s18  ;;  %p55_p7 = scmp.eq.s32.totalorder %s479_s26, 0 }
  0x17   : > { %s1365_s29 = smov (%p36_p4, %s1363_s29), 0  ;;  %s67_s9 = sadd.s32 1, %s888_s17 }
  0x18   : > { %1323 = sst [smem:[#allocation14_spill]] %s1365_s29  ;;  %p1046_p8 = por %p55_p7, %p54_p6 }
  0x19   : > { %s1044_s6 = scalar_select %p39_p5, %s900_s20, %s41_s30  }
  0x1a   : > { %s1325_s7 = scalar_select %p1046_p8, 1, 0 }
  0x1b   : > { %1324 = sst [smem:[#allocation15_spill]] %s1044_s6  ;;  %s64_s8 = ssub.s32 %s916_s24, %s1365_s29 }
  0x1c   : > { %p65_p9 = scmp.eq.s32.totalorder %s64_s8, 0  ;;  %p74_p10 = scmp.ne.s32.totalorder %s888_s17, %s884_s16 }
  0x1d   : > { %p80_p11 = scmp.ne.s32.totalorder %s884_s16, %s880_s15  ;;  %s118_s30 = sor.u32 %s64_s8, %s38_s4 }
  0x1e   : > { %s1058_s10 = scalar_select %p65_p9, %s888_s17, %s67_s9  }
  0x1f   : > { %p1062_p12 = por %p74_p10, %p49_p2  ;;  %p1066_p13 = por %p80_p11, %p55_p7 }
  0x20   : > { %1326 = sst [smem:[#allocation16_spill]] %s1058_s10  ;;  %s121_s27 = sadd.s32 1, %s876_s14 }
  0x21   : > { %s1328_s18 = scalar_select %p1066_p13, 1, 0 }
  0x22   : > { %p119_p0 = scmp.eq.s32.totalorder %s118_s30, 0  ;;  %p131_p1 = scmp.ne.s32.totalorder %s876_s14, %s872_s13 }
  0x23   : > { %p132_p4 = scmp.eq.s32.totalorder %s479_s26, 3  ;;  %p137_p5 = scmp.ne.s32.totalorder %s872_s13, %s868_s12 }
  0x24   : > { %s1078_s15 = scalar_select %p119_p0, %s876_s14, %s121_s27  }
  0x25   : > { %p1080_p2 = por %p132_p4, %p131_p1  ;;  %s1331_s29 = sadd.s32 4294967294, %s920_s25  }
  0x26   : > { %1329 = sst [smem:[#allocation17_spill]] %s1078_s15  ;;  %p138_p6 = scmp.eq.s32.totalorder %s1331_s29, 3 }
  0x27   : > { %s1330_s9 = scalar_select %p1080_p2, 1, 0 }
  0x28   : > { %p590_p7 = scmp.lt.s32.totalorder %s920_s25, 4  ;;  %p1087_p9 = por %p138_p6, %p137_p5 }
  0x29   : > { %s158_s8 = sand.u32 1, %s900_s20   ;;  %s484_s28 = sshll.u32 %s912_s23, 7 }
  0x2a   : > { %s1332_s4 = scalar_select %p1087_p9, 1, 0 }
  0x2b   : > { %s483_s30 = sshll.u32 %s158_s8, 3  ;;  %s1333_s0 = sld [smem:[#allocation18_spill]] }
  0x2c   : > { %s162_s27 = scalar_lea.vmem [#allocation2], %s483_s30  ;;  %p1102_p10 = pnand %p590_p7, %p1034_p3 }
  0x2d   : > { %s169_s15 = sshll.u32 %s162_s27, 4  ;;  %p1108_p11 = pnand %p590_p7, %p1062_p12  ;;  %s1098_s15 = int_to_ptr.vmem [resolvable:$true] %s169_s15 }
  0x2e   : > { %p712_p5 = pneg %p1102_p10 }
  0x31   : > { %s1096_s10 = scalar_lea.hbm %s1333_s0, %s484_s28  ;;  %s159_s28 = scalar_lea.sflag [#allocation3], %s158_s8 }
  0x32   : > { %s710_s30 = scalar_lea.hbm %s1096_s10, 128  ;;  %s715_s11 = scalar_lea.hbm %s1333_s0, 256 }
  0x33   : > { %p711_p4 = scmp.ne.s32.totalorder %s1096_s10, %s710_s30  ;;  %p716_p12 = scmp.lt.u32.totalorder %s1096_s10, %s1333_s0 }
  0x34   : > { %p717_p7 = scmp.lt.u32.totalorder %s715_s11, %s710_s30  ;;  %p719_p1 = scmp.lt.u32.totalorder %s710_s30, %s1096_s10 }
  0x35   : > { %p713_p3 = pnand %p712_p5, %p711_p4 }
  0x36   : > { %p718_p0 = por %p717_p7, %p716_p12 }
  0x37   : > { %p714_p6 = pneg %p713_p3 }
  0x38   : > { %p720_p9 = por %p719_p1, %p718_p0 }
  0x3a   : > { %p721_p2 = pnand %p720_p9, %p714_p6 }
  0x3c   : > { %724 = shalt.err (!%p721_p2)
}
  0x3d   : > { %s725_s8 = scalar_lea.vmem %s1098_s15, 128  ;;  %s922_s5 = smov [#allocation2]  }
  0x3e   : > { %p726_p4 = scmp.ne.s32.totalorder %s1098_s15, %s725_s8  ;;  %s730_s26 = sshll.u32 %s922_s5, 4  ;;  %s731_s26 = int_to_ptr.vmem [resolvable:$false] %s730_s26 }
  0x3f   : > { %s732_s23 = scalar_lea.vmem %s731_s26, 256  ;;  %p733_p8 = scmp.lt.s32.totalorder %s1098_s15, %s731_s26 }
  0x40   : > { %p728_p3 = pnand %p726_p4, %p712_p5  ;;  %p734_p12 = scmp.lt.s32.totalorder %s732_s23, %s725_s8 }
  0x42   : > { %p729_p13 = pneg %p728_p3  ;;  %p735_p7 = por %p734_p12, %p733_p8 }
  0x44   : > { %p736_p0 = pnand %p735_p7, %p729_p13 }
  0x46   : > { %739 = shalt.err (!%p736_p0)
}
  0x47   : > { %582 = dma.hbm_to_vmem [thread:$0]  (!%p1102_p10), %s1096_s10, 128, %s1098_s15, %s159_s28  }
  0x48   : > { %p1336_p2 = scmp.lt.s32.totalorder %s920_s25, 5  ;;  %p1337_p9 = scmp.ge.s32.totalorder %s920_s25, 1 }
  0x49   : > { %s176_s11 = sand.u32 1, %s888_s17   ;;  %s486_s27 = sshll.u32 %s916_s24, 7 }
  0x4a   : > { %p1143_p1 = pnand %p1337_p9, %p1336_p2  ;;  %s485_s8 = sshll.u32 %s176_s11, 7 }
  0x4b   : > { %s1152_s26 = scalar_lea.hbm %s1308_s1, %s486_s27  ;;  %s180_s23 = scalar_lea.vmem [#allocation5], %s485_s8 }
  0x4c   : > { %s186_s10 = sshll.u32 %s180_s23, 4  ;;  %s1156_s15 = scalar_lea.sflag [#allocation6], %s176_s11  ;;  %s1154_s10 = int_to_ptr.vmem [resolvable:$true] %s186_s10 }
  0x4d   : > { %s740_s28 = scalar_lea.hbm %s1152_s26, 2048  ;;  %p742_p13 = pneg %p1108_p11 }
  0x4e   : > { %p741_p8 = scmp.ne.s32.totalorder %s1152_s26, %s740_s28  ;;  %s745_s29 = scalar_lea.hbm %s1308_s1, 4096 }
  0x4f   : > { %p746_p6 = scmp.lt.u32.totalorder %s1152_s26, %s1308_s1  ;;  %p747_p4 = scmp.lt.u32.totalorder %s745_s29, %s740_s28 }
  0x50   : > { %p743_p10 = pnand %p742_p13, %p741_p8  ;;  %p749_p12 = scmp.lt.u32.totalorder %s740_s28, %s1152_s26 }
  0x51   : > { %p748_p3 = por %p747_p4, %p746_p6 }
  0x52   : > { %p744_p5 = pneg %p743_p10 }
  0x53   : > { %p750_p7 = por %p749_p12, %p748_p3 }
  0x55   : > { %p751_p0 = pnand %p750_p7, %p744_p5 }
  0x57   : > { %754 = shalt.err (!%p751_p0)
}
  0x58   : > { %s755_s11 = scalar_lea.vmem %s1154_s10, 2048  ;;  %s923_s8 = smov [#allocation5]  }
  0x59   : > { %p756_p2 = scmp.ne.s32.totalorder %s1154_s10, %s755_s11  ;;  %s760_s23 = sshll.u32 %s923_s8, 4  ;;  %s761_s23 = int_to_ptr.vmem [resolvable:$false] %s760_s23 }
  0x5a   : > { %s762_s0 = scalar_lea.vmem %s761_s23, 4096  ;;  %p763_p10 = scmp.lt.s32.totalorder %s1154_s10, %s761_s23 }
  0x5b   : > { %p758_p9 = pnand %p756_p2, %p742_p13  ;;  %p764_p6 = scmp.lt.s32.totalorder %s762_s0, %s755_s11 }
  0x5d   : > { %p759_p8 = pneg %p758_p9  ;;  %p765_p4 = por %p764_p6, %p763_p10 }
  0x5f   : > { %p766_p3 = pnand %p765_p4, %p759_p8 }
  0x61   : > { %769 = shalt.err (!%p766_p3)
}
  0x62   : > { %s924_s24 = smov 256   ;;  %s925_s28 = smov 128  }
  0x63   : > { %s926_s27 = smov 8   ;;  %204 = sbr.rel (%p1143_p1) target bundleno = 373 (0x175), region = 32 }
  0x64   : > { %585 = dma.hbm_to_vmem [thread:$0]  (!%p1108_p11), %s1152_s26, 2048, %s1154_s10, %s1156_s15, %s924_s24, %s925_s28, %s926_s27  }
  0x65   : > { %s206_s5 = sand.u32 (!%p1143_p1), 1, %s896_s19   ;;  %p1339_p13 = scmp.ne.s32.totalorder (!%p1143_p1), %s1325_s7, 0 }
  0x66   : > { %s1187_s29 = sshll.u32 (!%p1143_p1), %s206_s5, 3  ;;  %s207_s11 = scalar_lea.sflag (!%p1143_p1), [#allocation3], %s206_s5 }
  0x67   : > { %s210_s8 = scalar_lea.vmem (!%p1143_p1), [#allocation2], %s1187_s29 }
  0x6a   : > { %855 = dma.done.wait (%p1339_p13), %s207_s11, 128  }
  0x6b   : > { %857 = vsyncadd (%p1339_p13), %s207_s11, 4294967168  ;;  %s215_s6 = sand.u32 1, %s884_s16   ;;  %p1340_p11 = scmp.ne.s32.totalorder %s1328_s18, 0 }
  0x6c   : > { %s489_s26 = sshll.u32 %s215_s6, 7  ;;  %s216_s10 = scalar_lea.sflag [#allocation6], %s215_s6 }
  0x6d   : > { %s1195_s30 = scalar_lea.vmem [#allocation5], %s489_s26 }
  0x6e   : > { %859 = dma.done.wait (%p1340_p11), %s216_s10, 2048  }
  0x6f   : > { %861 = vsyncadd (%p1340_p11), %s216_s10, 4294965248  ;;  %v927_v0 = vmov 0.0|0.0   ;;  %vm928_vm0 = vmmov 0   ;;  %v929_v1 = vmov 0.0   ;;  %v254_v2 = vld [vmem:[%s1195_s30] sm:$0xff]  ;;  %v255_v3 = vld [vmem:[%s1195_s30 + $0x8] sm:$0xff] }
  0x70   : > { %549 = vmatprep.subr.bf16.mxu0 %v927_v0  ;;  %546 = vmatprep.mubr.msk.f32.mxu0 %vm928_vm0, %v929_v1  ;;  %v256_v4 = vld [vmem:[%s1195_s30 + $0x10] sm:$0xff]  ;;  %v550_v5 = vpack.c.bf16 %v255_v3, %v254_v2  ;;  %v257_v6 = vld [vmem:[%s1195_s30 + $0x18] sm:$0xff]  ;;  %v258_v8 = vld [vmem:[%s1195_s30 + $0x20] sm:$0xff]  ;;  %s247_s7 = sand.u32 1, %s872_s13   ;;  %p250_p1 = scmp.lt.s32.totalorder %s908_s22, 1 }
  0x71   : > { %v553_v7 = vpack.c.bf16 %v257_v6, %v256_v4  ;;  %v259_v9 = vld [vmem:[%s1195_s30 + $0x28] sm:$0xff]  ;;  %v260_v11 = vld [vmem:[%s1195_s30 + $0x30] sm:$0xff]  ;;  %v261_v12 = vld [vmem:[%s1195_s30 + $0x38] sm:$0xff]  ;;  %s490_s18 = sshll.u32 %s247_s7, 3  ;;  %s493_s23 = sshll.u32 %s904_s21, 1 }
  0x72   : > { %551 = vmatpush3.bf16.msra.mxu0 %v550_v5  ;;  %v556_v10 = vpack.c.bf16 %v259_v9, %v258_v8  ;;  %v559_v13 = vpack.c.bf16 %v261_v12, %v260_v11  ;;  %v262_v14 = vld [vmem:[%s1195_s30 + $0x40] sm:$0xff]  ;;  %v263_v15 = vld [vmem:[%s1195_s30 + $0x48] sm:$0xff]  ;;  %v264_v17 = vld [vmem:[%s1195_s30 + $0x50] sm:$0xff]  ;;  %s251_s15 = scalar_select %p250_p1, %s908_s22, 1 }
  0x73   : > { %552 = vmatprep.subr.bf16.mxu0 %v927_v0  ;;  %v562_v16 = vpack.c.bf16 %v263_v15, %v262_v14  ;;  %v265_v18 = vld [vmem:[%s1195_s30 + $0x58] sm:$0xff]  ;;  %v266_v20 = vld [vmem:[%s1195_s30 + $0x60] sm:$0xff]  ;;  %v267_v21 = vld [vmem:[%s1195_s30 + $0x68] sm:$0xff]  ;;  %s360_s27 = sadd.s32 %s908_s22, %s493_s23  ;;  %s249_s11 = scalar_lea.vmem [#allocation7], %s490_s18 }
  0x74   : > { %v565_v19 = vpack.c.bf16 %v265_v18, %v264_v17  ;;  %v568_v22 = vpack.c.bf16 %v267_v21, %v266_v20  ;;  %v268_v23 = vld [vmem:[%s1195_s30 + $0x70] sm:$0xff]  ;;  %v269_v24 = vld [vmem:[%s1195_s30 + $0x78] sm:$0xff]  ;;  %s252_s28 = scalar_lea.vmem %s1309_s2, %s251_s15  ;;  %s494_s5 = sshll.u32 %s360_s27, 7 }
  0x75   : > { %v571_v25 = vpack.c.bf16 %v269_v24, %v268_v23  ;;  %v253_v26 = vld [vmem:[%s210_s8] sm:$0xff]  ;;  %s364_s6 = sshll.u32 %s249_s11, 4  ;;  %s1230_s26 = scalar_lea.hbm %s1310_s3, %s494_s5  ;;  %s1232_s6 = int_to_ptr.vmem [resolvable:$true] %s364_s6 }
  0x76   : > { %554 = vmatpush3.bf16.msra.mxu0 %v553_v7  ;;  %v491_v27 = vld [vmem:[%s252_s28] ss:$0 sm:$0xff]  ;;  %s349_s21 = scalar_lea.sflag [#allocation4], %s247_s7  ;;  %s770_s22 = scalar_lea.vmem %s1232_s6, 128 }
  0x77   : > { %555 = vmatprep.subr.bf16.mxu0 %v927_v0  ;;  %p771_p5 = scmp.ne.s32.totalorder %s1232_s6, %s770_s22  ;;  %p1341_p12 = scmp.ne.s32.totalorder %s1330_s9, 0 }
  0x78   : > { %s930_s10 = smov [#allocation7]  }
  0x79   : > { %p772_p7 = pnand %p771_p5, %p1341_p12  ;;  %s774_s30 = sshll.u32 %s930_s10, 4  ;;  %s775_s30 = int_to_ptr.vmem [resolvable:$false] %s774_s30 }
  0x7a   : > { %557 = vmatpush3.bf16.msra.mxu0 %v556_v10  ;;  %s776_s18 = scalar_lea.vmem %s775_s30, 256  ;;  %p777_p2 = scmp.lt.s32.totalorder %s1232_s6, %s775_s30 }
  0x7b   : > { %558 = vmatprep.subr.bf16.mxu0 %v927_v0  ;;  %p773_p0 = pneg %p772_p7  ;;  %p778_p9 = scmp.lt.s32.totalorder %s776_s18, %s770_s22 }
  0x7d   : > { %p779_p8 = por %p778_p9, %p777_p2 }
  0x7e   : > { %560 = vmatpush3.bf16.msra.mxu0 %v559_v13 }
  0x7f   : > { %561 = vmatprep.subr.bf16.mxu0 %v927_v0  ;;  %p780_p10 = pnand %p779_p8, %p773_p0 }
  0x82   : > { %563 = vmatpush3.bf16.msra.mxu0 %v562_v16 }
  0x83   : > { %564 = vmatprep.subr.bf16.mxu0 %v927_v0 }
  0x86   : > { %566 = vmatpush3.bf16.msra.mxu0 %v565_v19 }
  0x87   : > { %567 = vmatprep.subr.bf16.mxu0 %v927_v0 }
  0x8a   : > { %569 = vmatpush3.bf16.msra.mxu0 %v568_v22 }
  0x8b   : > { %570 = vmatprep.subr.bf16.mxu0 %v927_v0 }
  0x8e   : > { %572 = vmatpush3.bf16.msra.mxu0 %v571_v25 }
  0x91   : > { %547 = vmatmul.mubr.f32.vlgmr.msra.gmra.mrb[0].mxu0 %v253_v26 }
 0x164   : > { %v343_v28 = vpop.f32.mrb[0].mxu0 }
 0x165   : > { %v344_v29 = vadd.f32 %v491_v27, %v343_v28  ;;  %v548_v30 = vpop.f32.mrb[1].mxu0 }
 0x167   : > { %347 = vst [vmem:[%s249_s11] sm:$0xff] %v344_v29 }
 0x168   : > { %783 = shalt.err (!%p780_p10)
}
 0x169   : > { %s784_s7 = scalar_lea.hbm %s1230_s26, 128  ;;  %s788_s0 = scalar_lea.hbm %s1310_s3, 512 }
 0x16a   : > { %p785_p6 = scmp.ne.s32.totalorder %s1230_s26, %s784_s7  ;;  %p789_p13 = scmp.lt.u32.totalorder %s1230_s26, %s1310_s3 }
 0x16b   : > { %p790_p11 = scmp.lt.u32.totalorder %s788_s0, %s784_s7  ;;  %p792_p5 = scmp.lt.u32.totalorder %s784_s7, %s1230_s26 }
 0x16c   : > { %p786_p4 = pnand %p785_p6, %p1341_p12 }
 0x16d   : > { %p791_p1 = por %p790_p11, %p789_p13 }
 0x16e   : > { %p787_p3 = pneg %p786_p4 }
 0x16f   : > { %p793_p7 = por %p792_p5, %p791_p1 }
 0x171   : > { %p794_p0 = pnand %p793_p7, %p787_p3 }
 0x173   : > { %797 = shalt.err (!%p794_p0)
}
 0x174   : > { %577 = dma.vmem_to_hbm [thread:$0]  (%p1341_p12), %s1232_s6, 128, %s1230_s26, %s349_s21  }
 0x175 PF: > { %p591_p2 = scmp.ge.s32.totalorder %s920_s25, 2  ;;  %s376_s27 = sand.u32 1, %s868_s12  }
 0x176   : > { %p1342_p9 = scmp.ne.s32.totalorder %s1332_s4, 0  ;;  %s377_s5 = scalar_lea.sflag [#allocation4], %s376_s27 }
 0x178   : > { %p587_p8 = pnand %p591_p2, %p1342_p9 }
 0x17a   : > { %863 = dma.done.wait (!%p587_p8), %s377_s5, 128  }
 0x17b   : > { %865 = vsyncadd (!%p587_p8), %s377_s5, 4294967168  ;;  %s22_s25 = sadd.s32 1, %s920_s25   ;;  %s1344_s9 = sld [smem:[#allocation17_spill]] }
 0x17c   : > { %p1260_p10 = scmp.ge.s32.totalorder %s22_s25, 6   ;;  %s1345_s6 = sld [smem:[#allocation16_spill]] }
 0x17d   : > { %s1346_s29 = sld [smem:[#allocation15_spill]]  ;;  %s1347_s21 = sld [smem:[#allocation11_spill]] }
 0x17e   : > { %s1348_s22 = sld [smem:[#allocation12_spill]]  ;;  %s1349_s23 = sld [smem:[#allocation13_spill]] }
 0x17f   : > { %s1350_s24 = sld [smem:[#allocation14_spill]]  ;;  %s1351_s12 = smov %s872_s13 }
 0x180   : > { %s1352_s13 = smov %s876_s14  ;;  %s1354_s15 = smov %s884_s16 }
 0x181   : > { %s1353_s14 = smov %s1344_s9  ;;  %s1355_s16 = smov %s888_s17 }
 0x182   : > { %s1356_s17 = smov %s1345_s6  ;;  %s1357_s18 = smov %s896_s19 }
 0x183   : > { %s1358_s19 = smov %s900_s20  ;;  %s1359_s20 = smov %s1346_s29 }
 0x184   :  { %21 = sbr.rel (!%p1260_p10) target bundleno = 14 (0xe), region = 93 }
 0x18b   :  { %382 = vsyncpa [#allocation3], 1 }
 0x18c   :  { %384 = vsyncpa [#allocation3 + $0x1], 1 }
 0x18d   :  { %385 = vsyncpa [#allocation6], 1 }
 0x18e   :  { %387 = vsyncpa [#allocation6 + $0x1], 1 }
 0x18f   :  { %388 = vsyncpa [#allocation4], 1 }
 0x190   :  { %390 = vsyncpa [#allocation4 + $0x1], 1 }

</bundles_post_ra>
